<compile_context>
chip_gen: v7x
topology: tpu7x:2x2x1
jax: 0.10.0
libtpu: 0.0.40
codegen_flags: <defaults>
</compile_context>

<pallas_src>
import jax
import jax.numpy as jnp
import numpy as np
from jax.experimental import pallas as pl
from jax.experimental.pallas import tpu as pltpu

EPS = 1e-5  # nn.BatchNorm1d default eps


def _round_up(x, m):
    return ((x + m - 1) // m) * m


# --------------------------------------------------------------------------
# Pallas kernel: 3 tiny folded-BN Linear matmuls + full-row assembly.
# --------------------------------------------------------------------------
def field_encoder_kernel(art_ref, mom_ref, feat_ref,
                         wa_ref, ba_ref, wm_ref, bm_ref, ws_ref, bs_ref,
                         uemb_ref, age_ref, gender_ref,
                         sing_ref, genre_ref, memb_ref,
                         out_ref):
    art = jnp.dot(art_ref[...], wa_ref[...],
                  preferred_element_type=jnp.float32) + ba_ref[...]
    mom = jnp.dot(mom_ref[...], wm_ref[...],
                  preferred_element_type=jnp.float32) + bm_ref[...]
    feat = jnp.dot(feat_ref[...], ws_ref[...],
                   preferred_element_type=jnp.float32) + bs_ref[...]
    # Assemble the full output row (lane concat in vregs, one wide store).
    out_ref[...] = jnp.concatenate(
        [uemb_ref[...], age_ref[...], gender_ref[...],
         art, mom, feat,
         sing_ref[...], genre_ref[...], memb_ref[...]], axis=1)


# --------------------------------------------------------------------------
# Wrapper glue (cheap JAX): gathers + BN folding; all heavy work in kernel.
# --------------------------------------------------------------------------
def _fold_bn(x, gamma, beta, w, b):
    """Fold training-mode BatchNorm1d (full-batch mean, biased var) into the
    following Linear:
        y = ((x - mean) * s + beta) @ W + b
          = x @ (s[:,None] * W) + ((beta - mean * s) @ W + b)
    """
    mean = jnp.mean(x, axis=0)
    var = jnp.mean((x - mean) ** 2, axis=0)
    s = gamma * jax.lax.rsqrt(var + EPS)
    w_f = w * s[:, None]
    b_f = (beta - mean * s) @ w + b
    return w_f, b_f


def field_encoder_forward(params, user, music, *, block_b=2048):
    H = params["UserEmb"].shape[1]
    B = user["id"].shape[0]

    # Embedding lookups: data-dependent HBM gathers stay in plain JAX.
    uemb = params["UserEmb"][user["id"]]
    age = params["age"][user["age"]]
    gender = params["gender"][user["gender"]]
    singers = params["singers"][music["singer"]]
    genre = params["genre"][music["genre"]]
    memb = params["MusicEmb"][music["id"]]

    # Fold the three BatchNorms into their Linear layers (full-batch stats are
    # computed here, before any batch tiling, so semantics match PyTorch).
    wa, ba = _fold_bn(user["articles"], params["a_gamma"], params["a_beta"],
                      params["ufeature_w"], params["ufeature_b"])
    wm, bm = _fold_bn(user["moments"], params["m_gamma"], params["m_beta"],
                      params["moments_w"], params["moments_b"])
    ws, bs = _fold_bn(music["features"], params["s_gamma"], params["s_beta"],
                      params["sfeature_w"], params["sfeature_b"])

    A = wa.shape[0]
    M = wm.shape[0]
    S = ws.shape[0]

    # Batch block: large (amortize ~0.35us/step pipeline overhead) but capped
    # so the batch grid has >= 2 steps when B allows (v7x megacore).
    B8 = _round_up(B, 8)
    bb = min(block_b, max(8, _round_up(B8 // 2, 8)))
    grid = (pl.cdiv(B, bb),)

    batch_spec = lambda cols: pl.BlockSpec((bb, cols), lambda i: (i, 0))
    resident_spec = lambda rows, cols: pl.BlockSpec((rows, cols), lambda i: (0, 0))

    out = pl.pallas_call(
        field_encoder_kernel,
        out_shape=jax.ShapeDtypeStruct((B, 9 * H), jnp.float32),
        grid_spec=pltpu.PrefetchScalarGridSpec(
            num_scalar_prefetch=0,
            grid=grid,
            in_specs=[
                batch_spec(A),              # articles
                batch_spec(M),              # moments
                batch_spec(S),              # features
                resident_spec(A, H),        # folded W_articles
                resident_spec(1, H),        # folded b_articles
                resident_spec(M, H),        # folded W_moments
                resident_spec(1, H),        # folded b_moments
                resident_spec(S, H),        # folded W_features
                resident_spec(1, H),        # folded b_features
                batch_spec(H),              # uemb
                batch_spec(H),              # age
                batch_spec(H),              # gender
                batch_spec(H),              # singers
                batch_spec(H),              # genre
                batch_spec(H),              # memb
            ],
            out_specs=pl.BlockSpec((bb, 9 * H), lambda i: (i, 0)),
        ),
        compiler_params=pltpu.CompilerParams(
            dimension_semantics=("parallel",)),
    )(user["articles"], user["moments"], music["features"],
      wa, ba.reshape(1, H), wm, bm.reshape(1, H), ws, bs.reshape(1, H),
      uemb, age, gender, singers, genre, memb)

    return out


# --------------------------------------------------------------------------
# Parameter construction / reference
# --------------------------------------------------------------------------
def _xavier_uniform(key, shape):
    fan_in, fan_out = shape[0], shape[1]
    limit = float(np.sqrt(6.0 / (fan_in + fan_out)))
    return jax.random.uniform(key, shape, jnp.float32, -limit, limit)


def make_params(key, hidden, article_len, moments_len, song_len):
    ks = jax.random.split(key, 12)
    return {
        "UserEmb": _xavier_uniform(ks[0], (190662, hidden)),
        "age": _xavier_uniform(ks[1], (6, hidden)),
        "gender": _xavier_uniform(ks[2], (2, hidden)),
        "singers": _xavier_uniform(ks[3], (417, hidden)),
        "genre": _xavier_uniform(ks[4], (18, hidden)),
        "MusicEmb": _xavier_uniform(ks[5], (42800, hidden)),
        "ufeature_w": _xavier_uniform(ks[6], (article_len, hidden)),
        "ufeature_b": jax.random.uniform(ks[7], (hidden,), jnp.float32, -0.1, 0.1),
        "moments_w": _xavier_uniform(ks[8], (moments_len, hidden)),
        "moments_b": jax.random.uniform(ks[9], (hidden,), jnp.float32, -0.1, 0.1),
        "sfeature_w": _xavier_uniform(ks[10], (song_len, hidden)),
        "sfeature_b": jax.random.uniform(ks[11], (hidden,), jnp.float32, -0.1, 0.1),
        "a_gamma": jnp.ones((article_len,), jnp.float32),
        "a_beta": jnp.zeros((article_len,), jnp.float32),
        "m_gamma": jnp.ones((moments_len,), jnp.float32),
        "m_beta": jnp.zeros((moments_len,), jnp.float32),
        "s_gamma": jnp.ones((song_len,), jnp.float32),
        "s_beta": jnp.zeros((song_len,), jnp.float32),
    }


def _reference(params, user, music):
    """Pure-JAX reference of the PyTorch forward (training-mode batchnorm)."""
    def bn(x, g, b):
        m = jnp.mean(x, axis=0, keepdims=True)
        v = jnp.mean((x - m) ** 2, axis=0, keepdims=True)
        return (x - m) / jnp.sqrt(v + EPS) * g + b

    uemb = params["UserEmb"][user["id"]]
    memb = params["MusicEmb"][music["id"]]
    age = params["age"][user["age"]]
    gender = params["gender"][user["gender"]]
    singers = params["singers"][music["singer"]]
    genre = params["genre"][music["genre"]]
    art = bn(user["articles"], params["a_gamma"], params["a_beta"]) @ params["ufeature_w"] + params["ufeature_b"]
    mom = bn(user["moments"], params["m_gamma"], params["m_beta"]) @ params["moments_w"] + params["moments_b"]
    feat = bn(music["features"], params["s_gamma"], params["s_beta"]) @ params["sfeature_w"] + params["sfeature_b"]
    return jnp.concatenate(
        [uemb, age, gender, art, mom, feat, singers, genre, memb], axis=1)


if __name__ == "__main__":
    # small config: hidden=32, user_article_len=16, moments_lda_len=12, song_feature_len=20
    B, H = 8, 32
    A_LEN, M_LEN, S_LEN = 16, 12, 20

    key = jax.random.PRNGKey(0)
    kp, k1, k2, k3, k4, k5, k6, k7, k8 = jax.random.split(key, 9)
    params = make_params(kp, H, A_LEN, M_LEN, S_LEN)

    user = {
        "id": jax.random.randint(k1, (B,), 0, 190662),
        "age": jax.random.randint(k2, (B,), 0, 6),
        "gender": jax.random.randint(k3, (B,), 0, 2),
        "articles": jax.random.normal(k4, (B, A_LEN), jnp.float32),
        "moments": jax.random.normal(k5, (B, M_LEN), jnp.float32),
    }
    music = {
        "id": jax.random.randint(k6, (B,), 0, 42800),
        "singer": jax.random.randint(k7, (B,), 0, 417),
        "genre": jax.random.randint(k8, (B,), 0, 18),
        "features": jax.random.normal(jax.random.fold_in(key, 99), (B, S_LEN), jnp.float32),
    }

    out = field_encoder_forward(params, user, music)
    out = jax.block_until_ready(out)

    ref = _reference(params, user, music)
    assert out.shape == (B, 9 * H), out.shape
    assert np.allclose(np.asarray(out), np.asarray(ref), atol=1e-4, rtol=1e-4), \
        "Pallas kernel output mismatch vs reference"

    print("KERNEL_OK")
</pallas_src>

<mosaic_0001>
module attributes {stable_mosaic.version = 11 : i64} {
  func.func @field_encoder_kernel(%arg0: i32, %arg1: memref<8x16xf32, #tpu.memory_space<vmem>>, %arg2: memref<8x12xf32, #tpu.memory_space<vmem>>, %arg3: memref<8x20xf32, #tpu.memory_space<vmem>>, %arg4: memref<16x32xf32, #tpu.memory_space<vmem>>, %arg5: memref<1x32xf32, #tpu.memory_space<vmem>>, %arg6: memref<12x32xf32, #tpu.memory_space<vmem>>, %arg7: memref<1x32xf32, #tpu.memory_space<vmem>>, %arg8: memref<20x32xf32, #tpu.memory_space<vmem>>, %arg9: memref<1x32xf32, #tpu.memory_space<vmem>>, %arg10: memref<8x32xf32, #tpu.memory_space<vmem>>, %arg11: memref<8x32xf32, #tpu.memory_space<vmem>>, %arg12: memref<8x32xf32, #tpu.memory_space<vmem>>, %arg13: memref<8x32xf32, #tpu.memory_space<vmem>>, %arg14: memref<8x32xf32, #tpu.memory_space<vmem>>, %arg15: memref<8x32xf32, #tpu.memory_space<vmem>>, %arg16: memref<8x288xf32, #tpu.memory_space<vmem>>) attributes {dimension_semantics = [#tpu.dimension_semantics<parallel>], iteration_bounds = array<i64: 1>, scalar_prefetch = 0 : i64, scratch_operands = 0 : i64, tpu.core_type = #tpu.core_type<tc>, window_params = [{transform_indices = @transform_0, window_bounds = array<i64: 8, 16>}, {transform_indices = @transform_1, window_bounds = array<i64: 8, 12>}, {transform_indices = @transform_2, window_bounds = array<i64: 8, 20>}, {pipeline_mode = #tpu.pipeline_mode<synchronous>, transform_indices = @transform_3, window_bounds = array<i64: 16, 32>}, {pipeline_mode = #tpu.pipeline_mode<synchronous>, transform_indices = @transform_4, window_bounds = array<i64: 1, 32>}, {pipeline_mode = #tpu.pipeline_mode<synchronous>, transform_indices = @transform_5, window_bounds = array<i64: 12, 32>}, {pipeline_mode = #tpu.pipeline_mode<synchronous>, transform_indices = @transform_6, window_bounds = array<i64: 1, 32>}, {pipeline_mode = #tpu.pipeline_mode<synchronous>, transform_indices = @transform_7, window_bounds = array<i64: 20, 32>}, {pipeline_mode = #tpu.pipeline_mode<synchronous>, transform_indices = @transform_8, window_bounds = array<i64: 1, 32>}, {transform_indices = @transform_9, window_bounds = array<i64: 8, 32>}, {transform_indices = @transform_10, window_bounds = array<i64: 8, 32>}, {transform_indices = @transform_11, window_bounds = array<i64: 8, 32>}, {transform_indices = @transform_12, window_bounds = array<i64: 8, 32>}, {transform_indices = @transform_13, window_bounds = array<i64: 8, 32>}, {transform_indices = @transform_14, window_bounds = array<i64: 8, 32>}, {transform_indices = @transform_15, window_bounds = array<i64: 8, 288>}]} {
    %c0 = arith.constant 0 : index
    %c0_0 = arith.constant 0 : index
    %0 = vector.load %arg1[%c0, %c0_0] : memref<8x16xf32, #tpu.memory_space<vmem>>, vector<8x16xf32>
    %c0_1 = arith.constant 0 : index
    %c0_2 = arith.constant 0 : index
    %1 = vector.load %arg4[%c0_1, %c0_2] : memref<16x32xf32, #tpu.memory_space<vmem>>, vector<16x32xf32>
    %cst = arith.constant dense<0.000000e+00> : vector<8x32xf32>
    %2 = tpu.matmul %0, %1, %cst {dimension_numbers = #tpu.dot_dimension_numbers<[1], [0], [0], [1], [0, 0, 1, 1], [], []>} : vector<8x16xf32>, vector<16x32xf32>, vector<8x32xf32> -> vector<8x32xf32>
    %c0_3 = arith.constant 0 : index
    %c0_4 = arith.constant 0 : index
    %3 = vector.load %arg5[%c0_3, %c0_4] : memref<1x32xf32, #tpu.memory_space<vmem>>, vector<1x32xf32>
    %4 = vector.broadcast %3 : vector<1x32xf32> to vector<8x32xf32>
    %5 = arith.addf %2, %4 : vector<8x32xf32>
    %c0_5 = arith.constant 0 : index
    %c0_6 = arith.constant 0 : index
    %6 = vector.load %arg2[%c0_5, %c0_6] : memref<8x12xf32, #tpu.memory_space<vmem>>, vector<8x12xf32>
    %c0_7 = arith.constant 0 : index
    %c0_8 = arith.constant 0 : index
    %7 = vector.load %arg6[%c0_7, %c0_8] : memref<12x32xf32, #tpu.memory_space<vmem>>, vector<12x32xf32>
    %cst_9 = arith.constant dense<0.000000e+00> : vector<8x32xf32>
    %8 = tpu.matmul %6, %7, %cst_9 {dimension_numbers = #tpu.dot_dimension_numbers<[1], [0], [0], [1], [0, 0, 1, 1], [], []>} : vector<8x12xf32>, vector<12x32xf32>, vector<8x32xf32> -> vector<8x32xf32>
    %c0_10 = arith.constant 0 : index
    %c0_11 = arith.constant 0 : index
    %9 = vector.load %arg7[%c0_10, %c0_11] : memref<1x32xf32, #tpu.memory_space<vmem>>, vector<1x32xf32>
    %10 = vector.broadcast %9 : vector<1x32xf32> to vector<8x32xf32>
    %11 = arith.addf %8, %10 : vector<8x32xf32>
    %c0_12 = arith.constant 0 : index
    %c0_13 = arith.constant 0 : index
    %12 = vector.load %arg3[%c0_12, %c0_13] : memref<8x20xf32, #tpu.memory_space<vmem>>, vector<8x20xf32>
    %c0_14 = arith.constant 0 : index
    %c0_15 = arith.constant 0 : index
    %13 = vector.load %arg8[%c0_14, %c0_15] : memref<20x32xf32, #tpu.memory_space<vmem>>, vector<20x32xf32>
    %cst_16 = arith.constant dense<0.000000e+00> : vector<8x32xf32>
    %14 = tpu.matmul %12, %13, %cst_16 {dimension_numbers = #tpu.dot_dimension_numbers<[1], [0], [0], [1], [0, 0, 1, 1], [], []>} : vector<8x20xf32>, vector<20x32xf32>, vector<8x32xf32> -> vector<8x32xf32>
    %c0_17 = arith.constant 0 : index
    %c0_18 = arith.constant 0 : index
    %15 = vector.load %arg9[%c0_17, %c0_18] : memref<1x32xf32, #tpu.memory_space<vmem>>, vector<1x32xf32>
    %16 = vector.broadcast %15 : vector<1x32xf32> to vector<8x32xf32>
    %17 = arith.addf %14, %16 : vector<8x32xf32>
    %c0_19 = arith.constant 0 : index
    %c0_20 = arith.constant 0 : index
    %18 = vector.load %arg10[%c0_19, %c0_20] : memref<8x32xf32, #tpu.memory_space<vmem>>, vector<8x32xf32>
    %c0_21 = arith.constant 0 : index
    %c0_22 = arith.constant 0 : index
    %19 = vector.load %arg11[%c0_21, %c0_22] : memref<8x32xf32, #tpu.memory_space<vmem>>, vector<8x32xf32>
    %c0_23 = arith.constant 0 : index
    %c0_24 = arith.constant 0 : index
    %20 = vector.load %arg12[%c0_23, %c0_24] : memref<8x32xf32, #tpu.memory_space<vmem>>, vector<8x32xf32>
    %c0_25 = arith.constant 0 : index
    %c0_26 = arith.constant 0 : index
    %21 = vector.load %arg13[%c0_25, %c0_26] : memref<8x32xf32, #tpu.memory_space<vmem>>, vector<8x32xf32>
    %c0_27 = arith.constant 0 : index
    %c0_28 = arith.constant 0 : index
    %22 = vector.load %arg14[%c0_27, %c0_28] : memref<8x32xf32, #tpu.memory_space<vmem>>, vector<8x32xf32>
    %c0_29 = arith.constant 0 : index
    %c0_30 = arith.constant 0 : index
    %23 = vector.load %arg15[%c0_29, %c0_30] : memref<8x32xf32, #tpu.memory_space<vmem>>, vector<8x32xf32>
    %24 = tpu.concatenate %18, %19, %20, %5, %11, %17, %21, %22, %23 in 1 : vector<8x32xf32>, vector<8x32xf32>, vector<8x32xf32>, vector<8x32xf32>, vector<8x32xf32>, vector<8x32xf32>, vector<8x32xf32>, vector<8x32xf32>, vector<8x32xf32> -> vector<8x288xf32>
    %c0_31 = arith.constant 0 : index
    %c0_32 = arith.constant 0 : index
    %25 = vector.load %arg16[%c0_31, %c0_32] : memref<8x288xf32, #tpu.memory_space<vmem>>, vector<8x288xf32>
    tpu.vector_store %arg16[%c0_31, %c0_32], %24 {strides = array<i32>} : memref<8x288xf32, #tpu.memory_space<vmem>>, vector<8x288xf32>,
    return
  }
  func.func @transform_0(%arg0: i32) -> (i32, i32) {
    %c0_i32 = arith.constant 0 : i32
    %c0_i32_0 = arith.constant 0 : i32
    return %arg0, %c0_i32 : i32, i32
  }
  func.func @transform_1(%arg0: i32) -> (i32, i32) {
    %c0_i32 = arith.constant 0 : i32
    %c0_i32_0 = arith.constant 0 : i32
    return %arg0, %c0_i32 : i32, i32
  }
  func.func @transform_2(%arg0: i32) -> (i32, i32) {
    %c0_i32 = arith.constant 0 : i32
    %c0_i32_0 = arith.constant 0 : i32
    return %arg0, %c0_i32 : i32, i32
  }
  func.func @transform_3(%arg0: i32) -> (i32, i32) {
    %c0_i32 = arith.constant 0 : i32
    %c0_i32_0 = arith.constant 0 : i32
    %c0_i32_1 = arith.constant 0 : i32
    return %c0_i32, %c0_i32_0 : i32, i32
  }
  func.func @transform_4(%arg0: i32) -> (i32, i32) {
    %c0_i32 = arith.constant 0 : i32
    %c0_i32_0 = arith.constant 0 : i32
    %c0_i32_1 = arith.constant 0 : i32
    return %c0_i32, %c0_i32_0 : i32, i32
  }
  func.func @transform_5(%arg0: i32) -> (i32, i32) {
    %c0_i32 = arith.constant 0 : i32
    %c0_i32_0 = arith.constant 0 : i32
    %c0_i32_1 = arith.constant 0 : i32
    return %c0_i32, %c0_i32_0 : i32, i32
  }
  func.func @transform_6(%arg0: i32) -> (i32, i32) {
    %c0_i32 = arith.constant 0 : i32
    %c0_i32_0 = arith.constant 0 : i32
    %c0_i32_1 = arith.constant 0 : i32
    return %c0_i32, %c0_i32_0 : i32, i32
  }
  func.func @transform_7(%arg0: i32) -> (i32, i32) {
    %c0_i32 = arith.constant 0 : i32
    %c0_i32_0 = arith.constant 0 : i32
    %c0_i32_1 = arith.constant 0 : i32
    return %c0_i32, %c0_i32_0 : i32, i32
  }
  func.func @transform_8(%arg0: i32) -> (i32, i32) {
    %c0_i32 = arith.constant 0 : i32
    %c0_i32_0 = arith.constant 0 : i32
    %c0_i32_1 = arith.constant 0 : i32
    return %c0_i32, %c0_i32_0 : i32, i32
  }
  func.func @transform_9(%arg0: i32) -> (i32, i32) {
    %c0_i32 = arith.constant 0 : i32
    %c0_i32_0 = arith.constant 0 : i32
    return %arg0, %c0_i32 : i32, i32
  }
  func.func @transform_10(%arg0: i32) -> (i32, i32) {
    %c0_i32 = arith.constant 0 : i32
    %c0_i32_0 = arith.constant 0 : i32
    return %arg0, %c0_i32 : i32, i32
  }
  func.func @transform_11(%arg0: i32) -> (i32, i32) {
    %c0_i32 = arith.constant 0 : i32
    %c0_i32_0 = arith.constant 0 : i32
    return %arg0, %c0_i32 : i32, i32
  }
  func.func @transform_12(%arg0: i32) -> (i32, i32) {
    %c0_i32 = arith.constant 0 : i32
    %c0_i32_0 = arith.constant 0 : i32
    return %arg0, %c0_i32 : i32, i32
  }
  func.func @transform_13(%arg0: i32) -> (i32, i32) {
    %c0_i32 = arith.constant 0 : i32
    %c0_i32_0 = arith.constant 0 : i32
    return %arg0, %c0_i32 : i32, i32
  }
  func.func @transform_14(%arg0: i32) -> (i32, i32) {
    %c0_i32 = arith.constant 0 : i32
    %c0_i32_0 = arith.constant 0 : i32
    return %arg0, %c0_i32 : i32, i32
  }
  func.func @transform_15(%arg0: i32) -> (i32, i32) {
    %c0_i32 = arith.constant 0 : i32
    %c0_i32_0 = arith.constant 0 : i32
    return %arg0, %c0_i32 : i32, i32
  }
}

</mosaic_0001>

<bundles_post_ra>
// kernel: tpu_custom_call.1
= control target key start
LH: loop header
LB: loop body
LE: loop exit
PB: predicated region body
PF: predicated region fallthrough
CT: control target
= control target key end

     0   :  { %20 = vsyncpa [#allocation3], 0  ;;  %s1092_s0 = inlined_call_operand.hbm [shape: f32[8,16], index: 0, kind: input, shape index: {}]   ;;  %s1093_s1 = inlined_call_operand.hbm [shape: f32[8,12], index: 1, kind: input, shape index: {}]   ;;  %s1094_s2 = inlined_call_operand.hbm [shape: f32[8,20], index: 2, kind: input, shape index: {}]   ;;  %s1095_s3 = inlined_call_operand.hbm [shape: f32[16,32], index: 3, kind: input, shape index: {}]   ;;  %s1096_s4 = inlined_call_operand.vmem [shape: f32[1,32], index: 4, kind: input, shape index: {}]   ;;  %s1097_s5 = inlined_call_operand.hbm [shape: f32[12,32], index: 5, kind: input, shape index: {}]   ;;  %s1098_s6 = inlined_call_operand.hbm [shape: f32[1,32], index: 6, kind: input, shape index: {}]   ;;  %s1099_s7 = inlined_call_operand.vmem [shape: f32[20,32], index: 7, kind: input, shape index: {}]   ;;  %s1100_s8 = inlined_call_operand.hbm [shape: f32[1,32], index: 8, kind: input, shape index: {}]   ;;  %s1101_s9 = inlined_call_operand.vmem [shape: f32[8,32], index: 9, kind: input, shape index: {}]   ;;  %s1102_s10 = inlined_call_operand.hbm [shape: f32[8,32], index: 10, kind: input, shape index: {}]   ;;  %s1103_s11 = inlined_call_operand.vmem [shape: f32[8,32], index: 11, kind: input, shape index: {}]   ;;  %s1104_s12 = inlined_call_operand.hbm [shape: f32[8,32], index: 12, kind: input, shape index: {}]   ;;  %s1105_s13 = inlined_call_operand.vmem [shape: f32[8,32], index: 13, kind: input, shape index: {}]   ;;  %s1106_s14 = inlined_call_operand.hbm [shape: f32[8,32], index: 14, kind: input, shape index: {}]   ;;  %s1107_s15 = inlined_call_operand.hbm [shape: f32[8,288], index: 15, kind: output, shape index: {}]  }
   0x1   :  { %21 = vsyncpa [#allocation6], 0 }
   0x2   :  { %22 = vsyncpa [#allocation9], 0 }
   0x3   :  { %23 = vsyncpa [#allocation12], 0 }
   0x4   :  { %24 = vsyncpa [#allocation15], 0 }
   0x5   :  { %25 = vsyncpa [#allocation18], 0 }
   0x6   :  { %26 = vsyncpa [#allocation4], 0  ;;  %s820_s18 = smov [#allocation5]   ;;  %s821_s20 = smov [#allocation8]  }
   0x7   :  { %s43_s19 = sshll.u32 %s820_s18, 4  ;;  %s62_s21 = sshll.u32 %s821_s20, 4  ;;  %s44_s19 = int_to_ptr.vmem [resolvable:$true] %s43_s19  ;;  %s920_s21 = int_to_ptr.vmem [resolvable:$true] %s62_s21 }
   0x8   :  { %s564_s24 = scalar_lea.hbm %s1093_s1, 128 }
   0x9   :  { %p565_p0 = scmp.ne.s32.totalorder %s1093_s1, %s564_s24  ;;  %p568_p1 = scmp.lt.u32.totalorder %s564_s24, %s1093_s1 }
   0xb   :  { %p570_p2 = pnand %p568_p1, %p565_p0 }
   0xd   :  { %573 = shalt.err (!%p570_p2)
}
   0xe   :  { %s574_s29 = scalar_lea.vmem %s44_s19, 128  ;;  %p579_p4 = scmp.lt.s32.totalorder %s44_s19, %s44_s19 }
   0xf   :  { %p575_p3 = scmp.ne.s32.totalorder %s44_s19, %s574_s29  ;;  %p580_p5 = scmp.lt.s32.totalorder %s574_s29, %s574_s29 }
  0x11   :  { %p581_p6 = por %p580_p5, %p579_p4 }
  0x13   :  { %p582_p7 = pnand %p581_p6, %p575_p3 }
  0x15   :  { %585 = shalt.err (!%p582_p7)
}
  0x16   :  { %46 = dma.hbm_to_vmem [thread:$0]  %s1093_s1, 128, %s44_s19, [#allocation6]  }
  0x17   :  { %s586_s20 = scalar_lea.hbm %s1095_s3, 256 }
  0x18   :  { %p587_p8 = scmp.ne.s32.totalorder %s1095_s3, %s586_s20  ;;  %p590_p9 = scmp.lt.u32.totalorder %s586_s20, %s1095_s3 }
  0x1a   :  { %p592_p10 = pnand %p590_p9, %p587_p8 }
  0x1c   :  { %595 = shalt.err (!%p592_p10)
}
  0x1d   :  { %s596_s26 = scalar_lea.vmem %s920_s21, 256  ;;  %p601_p12 = scmp.lt.s32.totalorder %s920_s21, %s920_s21 }
  0x1e   :  { %p597_p11 = scmp.ne.s32.totalorder %s920_s21, %s596_s26  ;;  %p602_p13 = scmp.lt.s32.totalorder %s596_s26, %s596_s26 }
  0x20   :  { %p603_p0 = por %p602_p13, %p601_p12 }
  0x22   :  { %p604_p1 = pnand %p603_p0, %p597_p11 }
  0x24   :  { %607 = shalt.err (!%p604_p1)
}
  0x25   :  { %s822_s1 = smov 128   ;;  %s823_s19 = smov 8  }
  0x26   :  { %68 = dma.hbm_to_vmem [thread:$0]  %s1095_s3, 256, %s920_s21, [#allocation9], %s822_s1, %s822_s1, %s823_s19  }
  0x27   :  { %s824_s29 = smov [#allocation11]   ;;  %s825_s16 = smov [#allocation14]  }
  0x28   :  { %s89_s30 = sshll.u32 %s824_s29, 4  ;;  %s113_s17 = sshll.u32 %s825_s16, 4  ;;  %s90_s30 = int_to_ptr.vmem [resolvable:$true] %s89_s30  ;;  %s114_s17 = int_to_ptr.vmem [resolvable:$true] %s113_s17 }
  0x29   :  { %s608_s22 = scalar_lea.hbm %s1098_s6, 16 }
  0x2a   :  { %p609_p2 = scmp.ne.s32.totalorder %s1098_s6, %s608_s22  ;;  %p612_p3 = scmp.lt.u32.totalorder %s608_s22, %s1098_s6 }
  0x2c   :  { %p614_p4 = pnand %p612_p3, %p609_p2 }
  0x2e   :  { %617 = shalt.err (!%p614_p4)
}
  0x2f   :  { %s618_s3 = scalar_lea.vmem %s90_s30, 16  ;;  %s622_s21 = scalar_lea.vmem %s90_s30, 32 }
  0x30   :  { %p619_p5 = scmp.ne.s32.totalorder %s90_s30, %s618_s3  ;;  %p623_p6 = scmp.lt.s32.totalorder %s90_s30, %s90_s30 }
  0x31   :  { %p624_p7 = scmp.lt.s32.totalorder %s622_s21, %s618_s3 }
  0x33   :  { %p625_p8 = por %p624_p7, %p623_p6 }
  0x35   :  { %p626_p9 = pnand %p625_p8, %p619_p5 }
  0x37   :  { %629 = shalt.err (!%p626_p9)
}
  0x38   :  { %92 = dma.hbm_to_vmem [thread:$0]  %s1098_s6, 16, %s90_s30, [#allocation12]  }
  0x39   :  { %s630_s18 = scalar_lea.hbm %s1102_s10, 128 }
  0x3a   :  { %p631_p10 = scmp.ne.s32.totalorder %s1102_s10, %s630_s18  ;;  %p634_p11 = scmp.lt.u32.totalorder %s630_s18, %s1102_s10 }
  0x3c   :  { %p636_p12 = pnand %p634_p11, %p631_p10 }
  0x3e   :  { %639 = shalt.err (!%p636_p12)
}
  0x3f   :  { %s640_s25 = scalar_lea.vmem %s114_s17, 128  ;;  %p645_p0 = scmp.lt.s32.totalorder %s114_s17, %s114_s17 }
  0x40   :  { %p641_p13 = scmp.ne.s32.totalorder %s114_s17, %s640_s25  ;;  %p646_p1 = scmp.lt.s32.totalorder %s640_s25, %s640_s25 }
  0x42   :  { %p647_p2 = por %p646_p1, %p645_p0 }
  0x44   :  { %p648_p3 = pnand %p647_p2, %p641_p13 }
  0x46   :  { %651 = shalt.err (!%p648_p3)
}
  0x47   :  { %116 = dma.hbm_to_vmem [thread:$0]  %s1102_s10, 128, %s114_s17, [#allocation15]  }
  0x48   :  { %s826_s26 = smov [#allocation2]   ;;  %s827_s21 = smov [#allocation7]  }
  0x49   :  { %s33_s3 = sshll.u32 %s826_s26, 4  ;;  %s53_s27 = sshll.u32 %s827_s21, 4  ;;  %s34_s3 = int_to_ptr.vmem [resolvable:$true] %s33_s3  ;;  %s54_s27 = int_to_ptr.vmem [resolvable:$true] %s53_s27 }
  0x4a   :  { %s652_s16 = scalar_lea.hbm %s1092_s0, 128 }
  0x4b   :  { %p653_p4 = scmp.ne.s32.totalorder %s1092_s0, %s652_s16  ;;  %p656_p5 = scmp.lt.u32.totalorder %s652_s16, %s1092_s0 }
  0x4d   :  { %p658_p6 = pnand %p656_p5, %p653_p4 }
  0x4f   :  { %661 = shalt.err (!%p658_p6)
}
  0x50   :  { %s662_s10 = scalar_lea.vmem %s34_s3, 128  ;;  %p667_p8 = scmp.lt.s32.totalorder %s34_s3, %s34_s3 }
  0x51   :  { %p663_p7 = scmp.ne.s32.totalorder %s34_s3, %s662_s10  ;;  %p668_p9 = scmp.lt.s32.totalorder %s662_s10, %s662_s10 }
  0x53   :  { %p669_p10 = por %p668_p9, %p667_p8 }
  0x55   :  { %p670_p11 = pnand %p669_p10, %p663_p7 }
  0x57   :  { %673 = shalt.err (!%p670_p11)
}
  0x58   :  { %36 = dma.hbm_to_vmem [thread:$0]  %s1092_s0, 128, %s34_s3, [#allocation3]  }
  0x59   :  { %s674_s30 = scalar_lea.hbm %s1094_s2, 128 }
  0x5a   :  { %p675_p12 = scmp.ne.s32.totalorder %s1094_s2, %s674_s30  ;;  %p678_p13 = scmp.lt.u32.totalorder %s674_s30, %s1094_s2 }
  0x5c   :  { %p680_p0 = pnand %p678_p13, %p675_p12 }
  0x5e   :  { %683 = shalt.err (!%p680_p0)
}
  0x5f   :  { %s684_s16 = scalar_lea.vmem %s54_s27, 128  ;;  %p689_p2 = scmp.lt.s32.totalorder %s54_s27, %s54_s27 }
  0x60   :  { %p685_p1 = scmp.ne.s32.totalorder %s54_s27, %s684_s16  ;;  %p690_p3 = scmp.lt.s32.totalorder %s684_s16, %s684_s16 }
  0x62   :  { %p691_p4 = por %p690_p3, %p689_p2 }
  0x64   :  { %p692_p5 = pnand %p691_p4, %p685_p1 }
  0x66   :  { %695 = shalt.err (!%p692_p5)
}
  0x67   :  { %56 = dma.hbm_to_vmem [thread:$0]  %s1094_s2, 128, %s54_s27, [#allocation6]  }
  0x68   :  { %s828_s18 = smov [#allocation10]   ;;  %s829_s22 = smov [#allocation13]  }
  0x69   :  { %s76_s20 = sshll.u32 %s828_s18, 4  ;;  %s101_s23 = sshll.u32 %s829_s22, 4  ;;  %s77_s20 = int_to_ptr.vmem [resolvable:$true] %s76_s20  ;;  %s102_s23 = int_to_ptr.vmem [resolvable:$true] %s101_s23 }
  0x6a   :  { %s696_s24 = scalar_lea.hbm %s1097_s5, 256 }
  0x6b   :  { %p697_p6 = scmp.ne.s32.totalorder %s1097_s5, %s696_s24  ;;  %p700_p7 = scmp.lt.u32.totalorder %s696_s24, %s1097_s5 }
  0x6d   :  { %p702_p8 = pnand %p700_p7, %p697_p6 }
  0x6f   :  { %705 = shalt.err (!%p702_p8)
}
  0x70   :  { %s706_s2 = scalar_lea.vmem %s77_s20, 256  ;;  %p711_p10 = scmp.lt.s32.totalorder %s77_s20, %s77_s20 }
  0x71   :  { %p707_p9 = scmp.ne.s32.totalorder %s77_s20, %s706_s2  ;;  %p712_p11 = scmp.lt.s32.totalorder %s706_s2, %s706_s2 }
  0x73   :  { %p713_p12 = por %p712_p11, %p711_p10 }
  0x75   :  { %p714_p13 = pnand %p713_p12, %p707_p9 }
  0x77   :  { %717 = shalt.err (!%p714_p13)
}
  0x78   :  { %82 = dma.hbm_to_vmem [thread:$0]  %s1097_s5, 256, %s77_s20, [#allocation9], %s822_s1, %s822_s1, %s823_s19  }
  0x79   :  { %s718_s16 = scalar_lea.hbm %s1100_s8, 16 }
  0x7a   :  { %p719_p0 = scmp.ne.s32.totalorder %s1100_s8, %s718_s16  ;;  %p722_p1 = scmp.lt.u32.totalorder %s718_s16, %s1100_s8 }
  0x7c   :  { %p724_p2 = pnand %p722_p1, %p719_p0 }
  0x7e   :  { %727 = shalt.err (!%p724_p2)
}
  0x7f   :  { %s728_s10 = scalar_lea.vmem %s102_s23, 16  ;;  %s732_s17 = scalar_lea.vmem %s102_s23, 32 }
  0x80   :  { %p729_p3 = scmp.ne.s32.totalorder %s102_s23, %s728_s10  ;;  %p733_p4 = scmp.lt.s32.totalorder %s102_s23, %s102_s23 }
  0x81   :  { %p734_p5 = scmp.lt.s32.totalorder %s732_s17, %s728_s10 }
  0x83   :  { %p735_p6 = por %p734_p5, %p733_p4 }
  0x85   :  { %p736_p7 = pnand %p735_p6, %p729_p3 }
  0x87   :  { %739 = shalt.err (!%p736_p7)
}
  0x88   :  { %104 = dma.hbm_to_vmem [thread:$0]  %s1100_s8, 16, %s102_s23, [#allocation12]  }
  0x89   :  { %s830_s19 = smov [#allocation16]   ;;  %s831_s24 = smov [#allocation17]  }
  0x8a   :  { %s125_s20 = sshll.u32 %s830_s19, 4  ;;  %s137_s25 = sshll.u32 %s831_s24, 4  ;;  %s126_s20 = int_to_ptr.vmem [resolvable:$true] %s125_s20  ;;  %s138_s25 = int_to_ptr.vmem [resolvable:$true] %s137_s25 }
  0x8b   :  { %s740_s26 = scalar_lea.hbm %s1104_s12, 128 }
  0x8c   :  { %p741_p8 = scmp.ne.s32.totalorder %s1104_s12, %s740_s26  ;;  %p744_p9 = scmp.lt.u32.totalorder %s740_s26, %s1104_s12 }
  0x8e   :  { %p746_p10 = pnand %p744_p9, %p741_p8 }
  0x90   :  { %749 = shalt.err (!%p746_p10)
}
  0x91   :  { %s750_s8 = scalar_lea.vmem %s126_s20, 128  ;;  %p755_p12 = scmp.lt.s32.totalorder %s126_s20, %s126_s20 }
  0x92   :  { %p751_p11 = scmp.ne.s32.totalorder %s126_s20, %s750_s8  ;;  %p756_p13 = scmp.lt.s32.totalorder %s750_s8, %s750_s8 }
  0x94   :  { %p757_p0 = por %p756_p13, %p755_p12 }
  0x96   :  { %p758_p1 = pnand %p757_p0, %p751_p11 }
  0x98   :  { %761 = shalt.err (!%p758_p1)
}
  0x99   :  { %128 = dma.hbm_to_vmem [thread:$0]  %s1104_s12, 128, %s126_s20, [#allocation15]  }
  0x9a   :  { %s762_s3 = scalar_lea.hbm %s1106_s14, 128 }
  0x9b   :  { %p763_p2 = scmp.ne.s32.totalorder %s1106_s14, %s762_s3  ;;  %p766_p3 = scmp.lt.u32.totalorder %s762_s3, %s1106_s14 }
  0x9d   :  { %p768_p4 = pnand %p766_p3, %p763_p2 }
  0x9f   :  { %771 = shalt.err (!%p768_p4)
}
  0xa0   :  { %s772_s5 = scalar_lea.vmem %s138_s25, 128  ;;  %p777_p6 = scmp.lt.s32.totalorder %s138_s25, %s138_s25 }
  0xa1   :  { %p773_p5 = scmp.ne.s32.totalorder %s138_s25, %s772_s5  ;;  %p778_p7 = scmp.lt.s32.totalorder %s772_s5, %s772_s5 }
  0xa3   :  { %p779_p8 = por %p778_p7, %p777_p6 }
  0xa5   :  { %p780_p9 = pnand %p779_p8, %p773_p5 }
  0xa7   :  { %783 = shalt.err (!%p780_p9)
}
  0xa8   :  { %140 = dma.hbm_to_vmem [thread:$0]  %s1106_s14, 128, %s138_s25, [#allocation18]  }
  0xa9   :  { %806 = dma.done.wait [#allocation3], 128  }
  0xaa   :  { %807 = vsyncadd [#allocation3], 4294967168 }
  0xab   :  { %808 = dma.done.wait [#allocation6], 256  }
  0xac   :  { %809 = vsyncadd [#allocation6], 4294967040 }
  0xad   :  { %810 = dma.done.wait [#allocation9], 512  }
  0xae   :  { %811 = vsyncadd [#allocation9], 4294966784 }
  0xaf   :  { %812 = dma.done.wait [#allocation12], 32  }
  0xb0   :  { %813 = vsyncadd [#allocation12], 4294967264 }
  0xb1   :  { %814 = dma.done.wait [#allocation15], 256  }
  0xb2   :  { %815 = vsyncadd [#allocation15], 4294967040 }
  0xb3   :  { %816 = dma.done.wait [#allocation18], 128  }
  0xb4   :  { %817 = vsyncadd [#allocation18], 4294967168  ;;  %v832_v0 = vmov 0.0|0.0   ;;  %vm833_vm0 = vmmov 0   ;;  %v834_v1 = vmov 0.0   ;;  %v344_v2 = vld [vmem:[%s1099_s7] sm:$0xff] }
  0xb5   :  { %541 = vmatprep.subr.bf16.mxu0 %v832_v0  ;;  %534 = vmatprep.subr.bf16.mxu1 %v832_v0  ;;  %v345_v3 = vld [vmem:[%s1099_s7 + $0x8] sm:$0xff]  ;;  %v172_v5 = vld [vmem:[#allocation8] sm:$0xff]  ;;  %v173_v6 = vld [vmem:[#allocation8 + $0x8] sm:$0xff]  ;;  %vm269_vm1 = vcmask 1043456   ;;  %vm181_vm2 = vcmask 130048   ;;  %vm835_vm3 = vmmov 1  }
  0xb6   :  { %531 = vmatprep.mubr.msk.f32.mxu0 %vm833_vm0, %v834_v1  ;;  %515 = vmatprep.mubr.msk.f32.mxu1 %vm833_vm0, %v834_v1  ;;  %v542_v4 = vpack.c.bf16 %v345_v3, %v344_v2  ;;  %v535_v7 = vpack.c.bf16 %v173_v6, %v172_v5  ;;  %v256_v8 = vld [vmem:[#allocation10] sm:$0xff]  ;;  %v257_v9 = vld [vmem:[#allocation10 + $0x8] sm:$0xf]  ;;  %v432_v11 = vld [vmem:[#allocation14] sm:$0xff]  ;;  %vm354_vm5 = vcmask 162816   ;;  %s836_s2 = smov 64  }
  0xb7   :  { %v433_v10 = vld [vmem:[%s1103_s11] sm:$0xff]  ;;  %v346_v12 = vld [vmem:[%s1099_s7 + $0x10] sm:$0xf]  ;;  %v171_v13 = vld [vmem:[#allocation2] sm:$0xff]  ;;  %v538_v14 = vpack.c.bf16 %v257_v9, %v256_v8  ;;  %s837_s27 = smov 32   ;;  %vm265_vm6 = vcmask 97280  }
  0xb8   :  { %543 = vmatpush3.bf16.msra.mxu0 %v542_v4  ;;  %536 = vmatpush3.bf16.msra.mxu1 %v535_v7  ;;  %vm539_vm4 = vmpackc.low %vm269_vm1, %vm835_vm3  ;;  %v343_v15 = vld [vmem:[#allocation7] sm:$0xff]  ;;  %v255_v16 = vld [vmem:[#allocation5] sm:$0xff]  ;;  %s838_s21 = smov 96   ;;  %vm461_vm7 = vcmask 261120   ;;  %vm465_vm8 = vcmask 785408   ;;  %vm463_vm9 = vcmask 523264  }
  0xb9   :  { %529 = vmatprep.subr.mxu0 %v834_v1  ;;  %537 = vmatprep.subr.bf16.mxu1 %v832_v0  ;;  %v434_v17 = vld [vmem:[#allocation16] sm:$0xff]  ;;  %v436_v19 = vld [vmem:[#allocation17] sm:$0xff]  ;;  %v498_v20 = vld [vmem:[#allocation13] ss:$0 sm:$0xff] }
  0xba   :  { %442 = vrot.lane.b32.xlu1 %v433_v10, %s836_s2  ;;  %438 = vrot.lane.b32.xlu0 %v432_v11, %s837_s27  ;;  %v435_v18 = vld [vmem:[%s1105_s13] sm:$0xff]  ;;  %472 = vst.msk [vmem:[#allocation19 + $0x10] sm:$0xff] %vm461_vm7, %v436_v19  ;;  %v495_v33 = vld [vmem:[#allocation11] ss:$0 sm:$0xff] }
  0xbb   :  { %516 = vmatmul.mubr.msk.f32.vlgmr.msra.gmra.mrb[0].mxu1 %vm181_vm2, %v171_v13  ;;  %v493_v23 = vld [vmem:[%s1096_s4] ss:$0 sm:$0xff]  ;;  %s839_s4 = smov [#allocation19]  }
  0xbc   :  { %530 = vmatpush3.msk.msra.mxu0 %vm269_vm1, %v346_v12  ;;  %540 = vmatpush3.bf16.msk.msra.mxu1 %vm539_vm4, %v538_v14  ;;  %v431_v35 = vld [vmem:[%s1101_s9] sm:$0xff]  ;;  %s479_s29 = sshll.u32 %s839_s4, 4  ;;  %s480_s29 = int_to_ptr.vmem [resolvable:$true] %s479_s29 }
  0xbd   :  { %532 = vmatmul.mubr.msk.f32.vlgmr.msra.gmra.mrb[0].mxu0 %vm354_vm5, %v343_v15  ;;  %522 = vmatprep.mubr.msk.f32.mxu1 %vm833_vm0, %v834_v1  ;;  %s784_s16 = scalar_lea.vmem %s480_s29, 384  ;;  %p789_p11 = scmp.lt.s32.totalorder %s480_s29, %s480_s29 }
  0xbe   :  { %454 = vrot.lane.b32.xlu1 %v434_v17, %s836_s2  ;;  %p785_p10 = scmp.ne.s32.totalorder %s480_s29, %s784_s16  ;;  %p790_p12 = scmp.lt.s32.totalorder %s784_s16, %s784_s16 }
  0xbf   :  { %523 = vmatmul.mubr.msk.f32.vlgmr.msra.gmra.mrb[2].mxu1 %vm265_vm6, %v255_v16 }
  0xc0   :  { %p791_p13 = por %p790_p12, %p789_p11 }
  0xc2   :  { %458 = vrot.lane.b32.xlu1 %v435_v18, %s838_s21  ;;  %p792_p0 = pnand %p791_p13, %p785_p10 }
 0x12c   :  { %v443_v30 = vpop.permute.xlu1 %442  ;;  %v439_v31 = vpop.permute.xlu0 %438 }
 0x12d   :  { %v462_v38 = vsel %vm461_vm7, %v431_v35, %v439_v31 }
 0x12e   :  { %v464_v42 = vsel %vm463_vm9, %v462_v38, %v443_v30 }
 0x130   :  { %v455_v32 = vpop.permute.xlu1 %454 }
 0x134   :  { %v459_v37 = vpop.permute.xlu1 %458 }
 0x18e   :  { %v251_v21 = vpop.f32.mrb[0].mxu1 }
 0x18f   :  { %v517_v24 = vpop.f32.mrb[1].mxu1  ;;  %v252_v27 = vadd.f32 %v493_v23, %v251_v21 }
 0x190   :  { %v427_v22 = vpop.f32.mrb[0].mxu0 }
 0x191   :  { %v428_v25 = vadd.f32 %v498_v20, %v427_v22  ;;  %v533_v26 = vpop.f32.mrb[1].mxu0 }
 0x192   :  { %v339_v28 = vpop.f32.mrb[2].mxu1 }
 0x193   :  { %450 = vrot.lane.b32.xlu0 %v428_v25, %s837_s27  ;;  %v524_v29 = vpop.f32.mrb[3].mxu1  ;;  %v340_v34 = vadd.f32 %v495_v33, %v339_v28 }
 0x197   :  { %446 = vrot.lane.b32.xlu0 %v252_v27, %s838_s21 }
 0x205   :  { %v451_v36 = vpop.permute.xlu0 %450 }
 0x206   :  { %v467_v39 = vsel %vm461_vm7, %v340_v34, %v451_v36 }
 0x207   :  { %v468_v40 = vsel %vm463_vm9, %v467_v39, %v455_v32 }
 0x208   :  { %v469_v41 = vsel %vm465_vm8, %v468_v40, %v459_v37 }
 0x209   :  { %471 = vst [vmem:[#allocation19 + $0x8] sm:$0xff] %v469_v41  ;;  %v447_v43 = vpop.permute.xlu0 %446 }
 0x20a   :  { %v466_v44 = vsel %vm465_vm8, %v464_v42, %v447_v43 }
 0x20b   :  { %470 = vst [vmem:[#allocation19] sm:$0xff] %v466_v44 }
 0x20c   :  { %795 = shalt.err (!%p792_p0)
}
 0x20d   :  { %s796_s3 = scalar_lea.hbm %s1107_s15, 384 }
 0x20e   :  { %p797_p1 = scmp.ne.s32.totalorder %s1107_s15, %s796_s3  ;;  %p800_p2 = scmp.lt.u32.totalorder %s796_s3, %s1107_s15 }
 0x210   :  { %p802_p3 = pnand %p800_p2, %p797_p1 }
 0x212   :  { %805 = shalt.err (!%p802_p3)
}
 0x213   :  { %482 = dma.vmem_to_hbm [thread:$0]  %s480_s29, 384, %s1107_s15, [#allocation4]  }
 0x214   :  { %818 = dma.done.wait [#allocation4], 384  }
 0x215   :  { %819 = vsyncadd [#allocation4], 4294966912 }
 0x216   :  { %486 = vsyncpa [#allocation3], 1 }
 0x217   :  { %487 = vsyncpa [#allocation6], 1 }
 0x218   :  { %488 = vsyncpa [#allocation9], 1 }
 0x219   :  { %489 = vsyncpa [#allocation12], 1 }
 0x21a   :  { %490 = vsyncpa [#allocation15], 1 }
 0x21b   :  { %491 = vsyncpa [#allocation18], 1 }
 0x21c   :  { %492 = vsyncpa [#allocation4], 1 }

</bundles_post_ra>
